<compile_context>
chip_gen: v6e
topology: v6e:2x2x1
jax: 0.10.0
libtpu: 0.0.40
codegen_flags: <defaults>
</compile_context>

<pallas_src>
import functools

import jax
import jax.numpy as jnp
from jax import lax
from jax.experimental import pallas as pl
from jax.experimental.pallas import tpu as pltpu

_WIDTH = 256          # fused channel width (actor 128 | critic 128)
_H1, _H2, _H3 = 64, 128, 64


def _round_up(x, m):
    return (x + m - 1) // m * m


# ----------------------------------------------------------------------------
# Pallas kernel
# ----------------------------------------------------------------------------
def _actor_critic_kernel(state_ref, slab_ref, out_ref, *,
                         state_dim, s_pad, action_dim, out_w):
    f32 = jnp.float32
    A = action_dim
    off2 = s_pad
    off3 = s_pad + _WIDTH
    off4 = s_pad + 2 * _WIDTH
    offb = s_pad + 3 * _WIDTH

    cdt = slab_ref.dtype                       # matmul operand dtype (bf16)
    x = state_ref[...].astype(cdt)             # [TB, S]

    w1 = slab_ref[0:state_dim, :]              # [S, 256]
    w2 = slab_ref[off2:off2 + _WIDTH, :]       # [256, 256] block-diag
    w3 = slab_ref[off3:off3 + _WIDTH, :]
    w4 = slab_ref[off4:off4 + _WIDTH, :]
    b = slab_ref[offb:offb + 4, :].astype(f32)  # [4, 256] bias rows

    def dense(h, w, brow):
        return jnp.dot(h, w, preferred_element_type=f32) + b[brow:brow + 1, :]

    # fused actor|critic MLP: tanh in f32, cast back to bf16 for the MXU
    h = jnp.tanh(dense(x, w1, 0)).astype(cdt)
    h = jnp.tanh(dense(h, w2, 1)).astype(cdt)
    h = jnp.tanh(dense(h, w3, 2)).astype(cdt)
    raw = dense(h, w4, 3)                      # f32 [TB, 256]; logits at [0,A), value at lane A

    work = raw[:, :out_w]                      # aligned lane slice, lane-dense
    lane = lax.broadcasted_iota(jnp.int32, work.shape, 1)
    valid = lane < A

    # masked, max-shifted softmax over the first A lanes
    m = jnp.max(jnp.where(valid, work, f32(-1e30)), axis=-1, keepdims=True)
    shifted = work - m
    e = jnp.where(valid, jnp.exp(shifted), f32(0.0))
    z = jnp.sum(e, axis=-1, keepdims=True)
    inv_z = pl.reciprocal(z, approx=True)
    inv_z = inv_z * (2.0 - z * inv_z)          # one Newton step -> ~f32 exact
    probs = e * inv_z                          # zero outside [0, A)
    logp = jnp.where(valid, shifted - jnp.log(z), f32(0.0))
    entropy = -jnp.sum(probs * logp, axis=-1, keepdims=True)     # [TB, 1]
    value_at_a = jnp.where(lane == A, work, f32(0.0))            # value @ lane A

    # pack lane-dense output: probs [0,A) | logp [A,2A) | value @2A | ent @2A+1
    packed = (probs
              + pltpu.roll(logp, A, 1)
              + pltpu.roll(value_at_a, A, 1)
              + jnp.where(lane == (2 * A + 1), entropy, f32(0.0)))
    out_ref[...] = packed


# ----------------------------------------------------------------------------
# Wrapper: gridded pallas_call
# ----------------------------------------------------------------------------
@functools.partial(jax.jit, static_argnames=("state_dim", "action_dim"))
def actor_critic_forward(state, slab, *, state_dim, action_dim):
    """Returns (probs [B,A], log_probs [B,A], values [B,1], entropy [B])."""
    B = state.shape[0]
    A = action_dim
    assert 2 * A + 2 <= _WIDTH, "action_dim too large for packed output"
    out_w = 128 if (2 * A + 2) <= 128 else 256
    tb = B if B <= 512 else 512                 # >=512-row tiles when big
    s_pad = _round_up(state_dim, 8)

    kernel = functools.partial(
        _actor_critic_kernel,
        state_dim=state_dim, s_pad=s_pad, action_dim=A, out_w=out_w)

    packed = pl.pallas_call(
        kernel,
        out_shape=jax.ShapeDtypeStruct((B, out_w), jnp.float32),
        grid=(pl.cdiv(B, tb),),
        in_specs=[
            pl.BlockSpec((tb, state_dim), lambda i: (i, 0)),
            # full param slab, constant index -> fetched once, stays resident
            pl.BlockSpec(slab.shape, lambda i: (0, 0)),
        ],
        out_specs=pl.BlockSpec((tb, out_w), lambda i: (i, 0)),
        compiler_params=pltpu.CompilerParams(
            dimension_semantics=("parallel",)),
    )(state, slab)

    probs = packed[:, :A]
    logp = packed[:, A:2 * A]
    values = packed[:, 2 * A:2 * A + 1]
    entropy = packed[:, 2 * A + 1]
    return probs, logp, values, entropy


# ----------------------------------------------------------------------------
# Parameter init / packing
# ----------------------------------------------------------------------------
def init_params(key, state_dim, action_dim):
    """nn.Linear-style U(-1/sqrt(fan_in), +) init; W stored as [in, out]."""
    dims_actor = [(state_dim, _H1), (_H1, _H2), (_H2, _H3), (_H3, action_dim)]
    dims_critic = [(state_dim, _H1), (_H1, _H2), (_H2, _H3), (_H3, 1)]
    params = {}
    keys = jax.random.split(key, 16)
    k = 0
    for prefix, dims in (("a", dims_actor), ("c", dims_critic)):
        for i, (fin, fout) in enumerate(dims, start=1):
            bound = 1.0 / (fin ** 0.5)
            params[f"{prefix}w{i}"] = jax.random.uniform(
                keys[k], (fin, fout), jnp.float32, -bound, bound)
            params[f"{prefix}b{i}"] = jax.random.uniform(
                keys[k + 1], (fout,), jnp.float32, -bound, bound)
            k += 2
    return params


def pack_params(p, state_dim, action_dim, dtype=jnp.bfloat16):
    """Pack all actor/critic weights+biases into one block-diagonal slab."""
    A = action_dim
    s_pad = _round_up(state_dim, 8)
    off2 = s_pad
    off3 = s_pad + _WIDTH
    off4 = s_pad + 2 * _WIDTH
    offb = s_pad + 3 * _WIDTH
    rows = _round_up(offb + 4, 8)

    slab = jnp.zeros((rows, _WIDTH), jnp.float32)
    # layer 1 (fused actor|critic): [S, 256]
    slab = slab.at[0:state_dim, 0:_H1].set(p["aw1"])
    slab = slab.at[0:state_dim, _H1:2 * _H1].set(p["cw1"])
    # layer 2 block-diag: actor rows [0,64)->cols[0,128), critic rows[64,128)->cols[128,256)
    slab = slab.at[off2:off2 + _H1, 0:_H2].set(p["aw2"])
    slab = slab.at[off2 + _H1:off2 + 2 * _H1, _H2:2 * _H2].set(p["cw2"])
    # layer 3 block-diag
    slab = slab.at[off3:off3 + _H2, 0:_H3].set(p["aw3"])
    slab = slab.at[off3 + _H2:off3 + 2 * _H2, _H3:2 * _H3].set(p["cw3"])
    # layer 4: actor logits at cols [0,A), critic value at col A
    slab = slab.at[off4:off4 + _H3, 0:A].set(p["aw4"])
    slab = slab.at[off4 + _H3:off4 + 2 * _H3, A:A + 1].set(p["cw4"])
    # bias rows
    slab = slab.at[offb + 0, 0:_H1].set(p["ab1"])
    slab = slab.at[offb + 0, _H1:2 * _H1].set(p["cb1"])
    slab = slab.at[offb + 1, 0:_H2].set(p["ab2"])
    slab = slab.at[offb + 1, _H2:2 * _H2].set(p["cb2"])
    slab = slab.at[offb + 2, 0:_H3].set(p["ab3"])
    slab = slab.at[offb + 2, _H3:2 * _H3].set(p["cb3"])
    slab = slab.at[offb + 3, 0:A].set(p["ab4"])
    slab = slab.at[offb + 3, A:A + 1].set(p["cb4"])
    return slab.astype(dtype)


# ----------------------------------------------------------------------------
# act / evaluate (mirrors the PyTorch module)
# ----------------------------------------------------------------------------
@functools.partial(jax.jit, static_argnames=("state_dim", "action_dim"))
def evaluate(state, action, slab, *, state_dim, action_dim):
    _, logp, values, entropy = actor_critic_forward(
        state, slab, state_dim=state_dim, action_dim=action_dim)
    logp_a = jnp.take_along_axis(
        logp, action[:, None].astype(jnp.int32), axis=-1)[:, 0]
    return logp_a, values, entropy


@functools.partial(jax.jit, static_argnames=("state_dim", "action_dim"))
def act(key, state, slab, *, state_dim, action_dim):
    _, logp, _, _ = actor_critic_forward(
        state, slab, state_dim=state_dim, action_dim=action_dim)
    action = jax.random.categorical(key, logp, axis=-1)
    logp_a = jnp.take_along_axis(logp, action[:, None], axis=-1)[:, 0]
    return action, logp_a


# ----------------------------------------------------------------------------
# Pure-JAX reference (emulating the kernel's bf16 matmul operands)
# ----------------------------------------------------------------------------
def _ref_forward(state, p, compute_dtype=jnp.bfloat16):
    f32 = jnp.float32

    def q(a):
        return a.astype(compute_dtype).astype(f32)

    x = q(state)
    h = q(jnp.tanh(x @ q(p["aw1"]) + q(p["ab1"])))
    h = q(jnp.tanh(h @ q(p["aw2"]) + q(p["ab2"])))
    h = q(jnp.tanh(h @ q(p["aw3"]) + q(p["ab3"])))
    logits = h @ q(p["aw4"]) + q(p["ab4"])
    probs = jax.nn.softmax(logits, axis=-1)
    logp = jax.nn.log_softmax(logits, axis=-1)
    entropy = -jnp.sum(probs * logp, axis=-1)

    c = q(jnp.tanh(x @ q(p["cw1"]) + q(p["cb1"])))
    c = q(jnp.tanh(c @ q(p["cw2"]) + q(p["cb2"])))
    c = q(jnp.tanh(c @ q(p["cw3"]) + q(p["cb3"])))
    values = c @ q(p["cw4"]) + q(p["cb4"])
    return probs, logp, values, entropy


if __name__ == "__main__":
    key = jax.random.PRNGKey(0)
    k_param, k_state, k_action, k_sample = jax.random.split(key, 4)

    batch, state_dim, action_dim = 8, 32, 8

    params = init_params(k_param, state_dim, action_dim)
    slab = pack_params(params, state_dim, action_dim, dtype=jnp.bfloat16)
    state = jax.random.normal(k_state, (batch, state_dim), jnp.float32)
    action = jax.random.randint(k_action, (batch,), 0, action_dim)

    # evaluate() path (kernel hot path)
    logp_a, values, entropy = evaluate(
        state, action, slab, state_dim=state_dim, action_dim=action_dim)
    jax.block_until_ready((logp_a, values, entropy))

    # act() path (kernel + categorical sampling glue)
    sampled_action, sampled_logp = act(
        k_sample, state, slab, state_dim=state_dim, action_dim=action_dim)
    jax.block_until_ready((sampled_action, sampled_logp))

    # numerical sanity check vs bf16-emulating pure-JAX reference
    probs_k, logp_k, values_k, ent_k = actor_critic_forward(
        state, slab, state_dim=state_dim, action_dim=action_dim)
    probs_r, logp_r, values_r, ent_r = _ref_forward(state, params)

    tol = dict(atol=2e-2, rtol=2e-2)
    assert jnp.allclose(probs_k, probs_r, **tol)
    assert jnp.allclose(logp_k, logp_r, **tol)
    assert jnp.allclose(values_k, values_r, **tol)
    assert jnp.allclose(ent_k, ent_r, **tol)
    assert jnp.allclose(jnp.sum(probs_k, axis=-1), 1.0, atol=1e-3)
    assert logp_a.shape == (batch,)
    assert values.shape == (batch, 1)
    assert entropy.shape == (batch,)
    assert sampled_action.shape == (batch,)

    print("KERNEL_OK")
</pallas_src>

<mosaic_0001>
module attributes {stable_mosaic.version = 11 : i64} {
  func.func @_actor_critic_kernel(%arg0: i32, %arg1: memref<8x32xf32, #tpu.memory_space<vmem>>, %arg2: memref<808x256xbf16, #tpu.memory_space<vmem>>, %arg3: memref<8x128xf32, #tpu.memory_space<vmem>>) attributes {dimension_semantics = [#tpu.dimension_semantics<parallel>], iteration_bounds = array<i64: 1>, scalar_prefetch = 0 : i64, scratch_operands = 0 : i64, tpu.core_type = #tpu.core_type<tc>, window_params = [{transform_indices = @transform_0, window_bounds = array<i64: 8, 32>}, {pipeline_mode = #tpu.pipeline_mode<synchronous>, transform_indices = @transform_1, window_bounds = array<i64: 808, 256>}, {transform_indices = @transform_2, window_bounds = array<i64: 8, 128>}]} {
    %c0 = arith.constant 0 : index
    %c0_0 = arith.constant 0 : index
    %0 = vector.load %arg1[%c0, %c0_0] : memref<8x32xf32, #tpu.memory_space<vmem>>, vector<8x32xf32>
    %1 = arith.truncf %0 : vector<8x32xf32> to vector<8x32xbf16>
    %c0_1 = arith.constant 0 : index
    %c0_2 = arith.constant 0 : index
    %2 = vector.load %arg2[%c0_1, %c0_2] : memref<808x256xbf16, #tpu.memory_space<vmem>>, vector<32x256xbf16>
    %c32 = arith.constant 32 : index
    %c0_3 = arith.constant 0 : index
    %3 = vector.load %arg2[%c32, %c0_3] : memref<808x256xbf16, #tpu.memory_space<vmem>>, vector<256x256xbf16>
    %c288 = arith.constant 288 : index
    %c0_4 = arith.constant 0 : index
    %4 = vector.load %arg2[%c288, %c0_4] : memref<808x256xbf16, #tpu.memory_space<vmem>>, vector<256x256xbf16>
    %c544 = arith.constant 544 : index
    %c0_5 = arith.constant 0 : index
    %5 = vector.load %arg2[%c544, %c0_5] : memref<808x256xbf16, #tpu.memory_space<vmem>>, vector<256x256xbf16>
    %c800 = arith.constant 800 : index
    %c0_6 = arith.constant 0 : index
    %6 = vector.load %arg2[%c800, %c0_6] : memref<808x256xbf16, #tpu.memory_space<vmem>>, vector<4x256xbf16>
    %7 = arith.extf %6 : vector<4x256xbf16> to vector<4x256xf32>
    %cst = arith.constant dense<0.000000e+00> : vector<8x256xf32>
    %8 = tpu.matmul %1, %2, %cst {dimension_numbers = #tpu.dot_dimension_numbers<[1], [0], [0], [1], [0, 0, 1, 1], [], []>} : vector<8x32xbf16>, vector<32x256xbf16>, vector<8x256xf32> -> vector<8x256xf32>
    %9 = vector.extract_strided_slice %7 {offsets = [0, 0], sizes = [1, 256], strides = [1, 1]} : vector<4x256xf32> to vector<1x256xf32>
    %10 = vector.broadcast %9 : vector<1x256xf32> to vector<8x256xf32>
    %11 = arith.addf %8, %10 : vector<8x256xf32>
    %12 = math.tanh %11 : vector<8x256xf32>
    %13 = arith.truncf %12 : vector<8x256xf32> to vector<8x256xbf16>
    %cst_7 = arith.constant dense<0.000000e+00> : vector<8x256xf32>
    %14 = tpu.matmul %13, %3, %cst_7 {dimension_numbers = #tpu.dot_dimension_numbers<[1], [0], [0], [1], [0, 0, 1, 1], [], []>} : vector<8x256xbf16>, vector<256x256xbf16>, vector<8x256xf32> -> vector<8x256xf32>
    %15 = vector.extract_strided_slice %7 {offsets = [1, 0], sizes = [1, 256], strides = [1, 1]} : vector<4x256xf32> to vector<1x256xf32>
    %16 = vector.broadcast %15 : vector<1x256xf32> to vector<8x256xf32>
    %17 = arith.addf %14, %16 : vector<8x256xf32>
    %18 = math.tanh %17 : vector<8x256xf32>
    %19 = arith.truncf %18 : vector<8x256xf32> to vector<8x256xbf16>
    %cst_8 = arith.constant dense<0.000000e+00> : vector<8x256xf32>
    %20 = tpu.matmul %19, %4, %cst_8 {dimension_numbers = #tpu.dot_dimension_numbers<[1], [0], [0], [1], [0, 0, 1, 1], [], []>} : vector<8x256xbf16>, vector<256x256xbf16>, vector<8x256xf32> -> vector<8x256xf32>
    %21 = vector.extract_strided_slice %7 {offsets = [2, 0], sizes = [1, 256], strides = [1, 1]} : vector<4x256xf32> to vector<1x256xf32>
    %22 = vector.broadcast %21 : vector<1x256xf32> to vector<8x256xf32>
    %23 = arith.addf %20, %22 : vector<8x256xf32>
    %24 = math.tanh %23 : vector<8x256xf32>
    %25 = arith.truncf %24 : vector<8x256xf32> to vector<8x256xbf16>
    %cst_9 = arith.constant dense<0.000000e+00> : vector<8x256xf32>
    %26 = tpu.matmul %25, %5, %cst_9 {dimension_numbers = #tpu.dot_dimension_numbers<[1], [0], [0], [1], [0, 0, 1, 1], [], []>} : vector<8x256xbf16>, vector<256x256xbf16>, vector<8x256xf32> -> vector<8x256xf32>
    %27 = vector.extract_strided_slice %7 {offsets = [3, 0], sizes = [1, 256], strides = [1, 1]} : vector<4x256xf32> to vector<1x256xf32>
    %28 = vector.broadcast %27 : vector<1x256xf32> to vector<8x256xf32>
    %29 = arith.addf %26, %28 : vector<8x256xf32>
    %30 = vector.extract_strided_slice %29 {offsets = [0, 0], sizes = [8, 128], strides = [1, 1]} : vector<8x256xf32> to vector<8x128xf32>
    %31 = tpu.iota {dimensions = array<i32: 1>} : vector<8x128xi32>
    %c8_i32 = arith.constant 8 : i32
    %32 = vector.broadcast %c8_i32 : i32 to vector<8x128xi32>
    %33 = arith.cmpi slt, %31, %32 : vector<8x128xi32>
    %cst_10 = arith.constant -1.000000e+30 : f32
    %34 = vector.broadcast %cst_10 : f32 to vector<8x128xf32>
    %35 = arith.select %33, %30, %34 : vector<8x128xi1>, vector<8x128xf32>
    %cst_11 = arith.constant dense<0xFF800000> : vector<8xf32>
    %36 = vector.multi_reduction <maximumf>, %35, %cst_11 [1] : vector<8x128xf32> to vector<8xf32>
    %37 = vector.shape_cast %36 : vector<8xf32> to vector<8x1xf32>
    %38 = vector.broadcast %37 : vector<8x1xf32> to vector<8x128xf32>
    %39 = arith.subf %30, %38 : vector<8x128xf32>
    %40 = math.exp %39 : vector<8x128xf32>
    %cst_12 = arith.constant 0.000000e+00 : f32
    %41 = vector.broadcast %cst_12 : f32 to vector<8x128xf32>
    %42 = arith.select %33, %40, %41 : vector<8x128xi1>, vector<8x128xf32>
    %cst_13 = arith.constant dense<0.000000e+00> : vector<8xf32>
    %43 = vector.multi_reduction <add>, %42, %cst_13 [1] : vector<8x128xf32> to vector<8xf32>
    %44 = vector.shape_cast %43 : vector<8xf32> to vector<8x1xf32>
    %45 = tpu.reciprocal %44 {approx = true} : vector<8x1xf32> -> vector<8x1xf32>
    %46 = arith.mulf %44, %45 : vector<8x1xf32>
    %cst_14 = arith.constant 2.000000e+00 : f32
    %47 = vector.broadcast %cst_14 : f32 to vector<8x1xf32>
    %48 = arith.subf %47, %46 : vector<8x1xf32>
    %49 = arith.mulf %45, %48 : vector<8x1xf32>
    %50 = vector.broadcast %49 : vector<8x1xf32> to vector<8x128xf32>
    %51 = arith.mulf %42, %50 : vector<8x128xf32>
    %52 = math.log %44 : vector<8x1xf32>
    %53 = vector.broadcast %52 : vector<8x1xf32> to vector<8x128xf32>
    %54 = arith.subf %39, %53 : vector<8x128xf32>
    %cst_15 = arith.constant 0.000000e+00 : f32
    %55 = vector.broadcast %cst_15 : f32 to vector<8x128xf32>
    %56 = arith.select %33, %54, %55 : vector<8x128xi1>, vector<8x128xf32>
    %57 = arith.mulf %51, %56 : vector<8x128xf32>
    %cst_16 = arith.constant dense<0.000000e+00> : vector<8xf32>
    %58 = vector.multi_reduction <add>, %57, %cst_16 [1] : vector<8x128xf32> to vector<8xf32>
    %59 = vector.shape_cast %58 : vector<8xf32> to vector<8x1xf32>
    %cst_17 = arith.constant 0.000000e+00 : f32
    %60 = vector.broadcast %cst_17 : f32 to vector<8x1xf32>
    %61 = arith.subf %60, %59 : vector<8x1xf32>
    %c8_i32_18 = arith.constant 8 : i32
    %62 = vector.broadcast %c8_i32_18 : i32 to vector<8x128xi32>
    %63 = arith.cmpi eq, %31, %62 : vector<8x128xi32>
    %cst_19 = arith.constant 0.000000e+00 : f32
    %64 = vector.broadcast %cst_19 : f32 to vector<8x128xf32>
    %65 = arith.select %63, %30, %64 : vector<8x128xi1>, vector<8x128xf32>
    %c8_i32_20 = arith.constant 8 : i32
    %66 = tpu.dynamic_rotate %56 by %c8_i32_20 dim 1 : vector<8x128xf32>, i32 -> vector<8x128xf32>
    %67 = arith.addf %51, %66 : vector<8x128xf32>
    %c8_i32_21 = arith.constant 8 : i32
    %68 = tpu.dynamic_rotate %65 by %c8_i32_21 dim 1 : vector<8x128xf32>, i32 -> vector<8x128xf32>
    %69 = arith.addf %67, %68 : vector<8x128xf32>
    %c17_i32 = arith.constant 17 : i32
    %70 = vector.broadcast %c17_i32 : i32 to vector<8x128xi32>
    %71 = arith.cmpi eq, %31, %70 : vector<8x128xi32>
    %cst_22 = arith.constant 0.000000e+00 : f32
    %72 = vector.shape_cast %61 : vector<8x1xf32> to vector<8x1xf32>
    %73 = vector.broadcast %72 : vector<8x1xf32> to vector<8x128xf32>
    %74 = vector.broadcast %cst_22 : f32 to vector<8x128xf32>
    %75 = arith.select %71, %73, %74 : vector<8x128xi1>, vector<8x128xf32>
    %76 = arith.addf %69, %75 : vector<8x128xf32>
    %c0_23 = arith.constant 0 : index
    %c0_24 = arith.constant 0 : index
    %77 = vector.load %arg3[%c0_23, %c0_24] : memref<8x128xf32, #tpu.memory_space<vmem>>, vector<8x128xf32>
    tpu.vector_store %arg3[%c0_23, %c0_24], %76 {strides = array<i32>} : memref<8x128xf32, #tpu.memory_space<vmem>>, vector<8x128xf32>,
    return
  }
  func.func @transform_0(%arg0: i32) -> (i32, i32) {
    %c0_i32 = arith.constant 0 : i32
    %c0_i32_0 = arith.constant 0 : i32
    return %arg0, %c0_i32 : i32, i32
  }
  func.func @transform_1(%arg0: i32) -> (i32, i32) {
    %c0_i32 = arith.constant 0 : i32
    %c0_i32_0 = arith.constant 0 : i32
    %c0_i32_1 = arith.constant 0 : i32
    return %c0_i32, %c0_i32_0 : i32, i32
  }
  func.func @transform_2(%arg0: i32) -> (i32, i32) {
    %c0_i32 = arith.constant 0 : i32
    %c0_i32_0 = arith.constant 0 : i32
    return %arg0, %c0_i32 : i32, i32
  }
}

</mosaic_0001>

<bundles_post_ra>
// kernel: actor_critic_forward.1
= control target key start
LH: loop header
LB: loop body
LE: loop exit
PB: predicated region body
PF: predicated region fallthrough
CT: control target
= control target key end

     0   :  { %7 = vsyncpa [#allocation3], 0  ;;  %s1265_s0 = inlined_call_operand.hbm [shape: f32[8,32], index: 0, kind: input, shape index: {}]   ;;  %s1266_s1 = inlined_call_operand.hbm [shape: bf16[808,256], index: 1, kind: input, shape index: {}]   ;;  %s1267_s2 = inlined_call_operand.vmem [shape: f32[8,128], index: 2, kind: output, shape index: {}]  }
   0x1   :  { %8 = vsyncpa [#allocation5], 0  ;;  %s1211_s9 = smov [#allocation2]   ;;  %s1212_s11 = smov [#allocation4]  }
   0x2   :  { %s15_s10 = sshll.u32 %s1211_s9, 4  ;;  %s24_s12 = sshll.u32 %s1212_s11, 4  ;;  %s16_s10 = int_to_ptr.vmem [resolvable:$true] %s15_s10  ;;  %s25_s12 = int_to_ptr.vmem [resolvable:$true] %s24_s12 }
   0x3   :  { %s1175_s13 = scalar_lea.vmem %s16_s10, 128  ;;  %p1180_p1 = scmp.lt.s32.totalorder %s16_s10, %s16_s10 }
   0x4   :  { %p1176_p0 = scmp.ne.s32.totalorder %s16_s10, %s1175_s13  ;;  %p1181_p2 = scmp.lt.s32.totalorder %s1175_s13, %s1175_s13 }
   0x6   :  { %p1182_p3 = por %p1181_p2, %p1180_p1 }
   0x8   :  { %p1183_p4 = pnand %p1182_p3, %p1176_p0 }
   0xa   :  { %1186 = shalt.err (!%p1183_p4)
}
   0xb   :  { %18 = dma.hbm_to_vmem [thread:$0]  %s1265_s0, 128, %s16_s10, [#allocation3]  }
   0xc   :  { %s1195_s16 = scalar_lea.vmem %s25_s12, 12928  ;;  %p1200_p6 = scmp.lt.s32.totalorder %s25_s12, %s25_s12 }
   0xd   :  { %p1196_p5 = scmp.ne.s32.totalorder %s25_s12, %s1195_s16  ;;  %p1201_p7 = scmp.lt.s32.totalorder %s1195_s16, %s1195_s16 }
   0xf   :  { %p1202_p8 = por %p1201_p7, %p1200_p6 }
  0x11   :  { %p1203_p9 = pnand %p1202_p8, %p1196_p5 }
  0x13   :  { %1206 = shalt.err (!%p1203_p9)
}
  0x14   :  { %s1213_s17 = smov 128   ;;  %s1214_s18 = smov 8  }
  0x15   :  { %30 = dma.hbm_to_vmem [thread:$0]  %s1266_s1, 12928, %s25_s12, [#allocation5], %s1213_s17, %s1213_s17, %s1214_s18  }
  0x16   :  { %1207 = dma.done.wait [#allocation3], 128  }
  0x17   :  { %1208 = vsyncadd [#allocation3], 4294967168 }
  0x18   :  { %1209 = dma.done.wait [#allocation5], 12928  }
  0x19   :  { %1210 = vsyncadd [#allocation5], 4294954368  ;;  %v1215_v0 = vmov 0   ;;  %v999_v1 = vld [vmem:[#allocation4 + $0x14] ss:$8 sps:$4 sm:$0xff]   ;;  %vm171_vm0 = vcmask 261120   ;;  %v143_v61 = vlaneseq }
  0x1a   :  { %207 = vmatprep.mubr.bf16.mxu0 %v1215_v0  ;;  %v1001_v2 = vld [vmem:[#allocation4 + $0x10] ss:$8 sps:$4 sm:$0xff]   ;;  %187 = vmatprep.subr.bf16.mxu0 %v999_v1  ;;  %v1002_v3 = vld [vmem:[#allocation4 + $0x4] ss:$8 sps:$4 sm:$0xff]   ;;  %v1004_v4 = vld [vmem:[#allocation4] ss:$8 sps:$4 sm:$0xff]  }
  0x1b   :  { %v38_v5 = vld [vmem:[#allocation2] sm:$0xff]  ;;  %188 = vmatpush1.bf16.msra.mxu0 %v1001_v2  ;;  %v1008_v8 = vld [vmem:[#allocation4 + $0x84] ss:$8 sps:$4 sm:$0xff]   ;;  %v1010_v10 = vld [vmem:[#allocation4 + $0x80] ss:$8 sps:$4 sm:$0xff]   ;;  %v1239_v62 = vshrl.u32 %v143_v61, 7 }
  0x1c   :  { %v1005_v6 = vld [vmem:[#allocation4 + $0x94] ss:$8 sps:$4 sm:$0xff]   ;;  %189 = vmatprep.subr.bf16.mxu0 %v1002_v3  ;;  %v1007_v7 = vld [vmem:[#allocation4 + $0x90] ss:$8 sps:$4 sm:$0xff]   ;;  %v39_v9 = vpack.c.bf16 %v38_v5, %v38_v5  ;;  %v1014_v13 = vld [vmem:[#allocation4 + $0x64] ss:$8 sps:$4 sm:$0xff]  }
  0x1d   :  { %388 = vmatprep.subr.bf16.mxu1 %v1005_v6  ;;  %v1011_v11 = vld [vmem:[#allocation4 + $0x74] ss:$8 sps:$4 sm:$0xff]   ;;  %v1013_v12 = vld [vmem:[#allocation4 + $0x70] ss:$8 sps:$4 sm:$0xff]   ;;  %v1016_v14 = vld [vmem:[#allocation4 + $0x60] ss:$8 sps:$4 sm:$0xff]  }
  0x1e   :  { %389 = vmatpush1.bf16.msra.mxu1 %v1007_v7  ;;  %v1017_v15 = vld [vmem:[#allocation4 + $0x54] ss:$8 sps:$4 sm:$0xff]   ;;  %v1019_v16 = vld [vmem:[#allocation4 + $0x50] ss:$8 sps:$4 sm:$0xff]   ;;  %v1020_v17 = vld [vmem:[#allocation4 + $0x44] ss:$8 sps:$4 sm:$0xff]  }
  0x1f   :  { %190 = vmatpush1.bf16.msra.mxu0 %v1004_v4  ;;  %390 = vmatprep.subr.bf16.mxu1 %v1008_v8  ;;  %v1022_v18 = vld [vmem:[#allocation4 + $0x40] ss:$8 sps:$4 sm:$0xff]   ;;  %v1023_v19 = vld [vmem:[#allocation4 + $0x34] ss:$8 sps:$4 sm:$0xff]   ;;  %v1025_v20 = vld [vmem:[#allocation4 + $0x30] ss:$8 sps:$4 sm:$0xff]  }
  0x20   :  { %v1026_v21 = vld [vmem:[#allocation4 + $0x24] ss:$8 sps:$4 sm:$0xff]   ;;  %v1028_v22 = vld [vmem:[#allocation4 + $0x20] ss:$8 sps:$4 sm:$0xff]   ;;  %v1029_v23 = vld [vmem:[#allocation4 + $0x114] ss:$8 sps:$4 sm:$0xff]  }
  0x21   :  { %v1031_v24 = vld [vmem:[#allocation4 + $0x110] ss:$8 sps:$4 sm:$0xff]   ;;  %v1032_v25 = vld [vmem:[#allocation4 + $0x104] ss:$8 sps:$4 sm:$0xff]   ;;  %v1034_v26 = vld [vmem:[#allocation4 + $0x100] ss:$8 sps:$4 sm:$0xff]  }
  0x22   :  { %897 = vmatmul.mubr.msk.bf16.vlgmr.msra.gmra.mxu0 %vm171_vm0, %v39_v9  ;;  %391 = vmatpush1.bf16.msra.mxu1 %v1010_v10  ;;  %v1035_v27 = vld [vmem:[#allocation4 + $0xf4] ss:$8 sps:$4 sm:$0xff]   ;;  %v1037_v28 = vld [vmem:[#allocation4 + $0xf0] ss:$8 sps:$4 sm:$0xff]   ;;  %v1038_v29 = vld [vmem:[#allocation4 + $0xe4] ss:$8 sps:$4 sm:$0xff]  }
  0x23   :  { %392 = vmatprep.subr.bf16.mxu1 %v1011_v11  ;;  %v1040_v30 = vld [vmem:[#allocation4 + $0xe0] ss:$8 sps:$4 sm:$0xff]   ;;  %v1041_v31 = vld [vmem:[#allocation4 + $0xd4] ss:$8 sps:$4 sm:$0xff]   ;;  %v1043_v32 = vld [vmem:[#allocation4 + $0xd0] ss:$8 sps:$4 sm:$0xff]  }
  0x24   :  { %v1044_v33 = vld [vmem:[#allocation4 + $0xc4] ss:$8 sps:$4 sm:$0xff]   ;;  %v1046_v34 = vld [vmem:[#allocation4 + $0xc0] ss:$8 sps:$4 sm:$0xff]   ;;  %v1047_v35 = vld [vmem:[#allocation4 + $0xb4] ss:$8 sps:$4 sm:$0xff]  }
  0x25   :  { %v1049_v36 = vld [vmem:[#allocation4 + $0xb0] ss:$8 sps:$4 sm:$0xff]   ;;  %v1050_v37 = vld [vmem:[#allocation4 + $0xa4] ss:$8 sps:$4 sm:$0xff]   ;;  %v1052_v38 = vld [vmem:[#allocation4 + $0xa0] ss:$8 sps:$4 sm:$0xff]  }
  0x26   :  { %393 = vmatpush1.bf16.msra.mxu1 %v1013_v12  ;;  %v1053_v39 = vld [vmem:[#allocation4 + $0x190] ss:$8 sps:$4 sm:$0xff]   ;;  %v1055_v40 = vld [vmem:[#allocation4 + $0x194] ss:$8 sps:$4 sm:$0xff]   ;;  %v1058_v41 = vld [vmem:[#allocation4 + $0x184] ss:$8 sps:$4 sm:$0xff]  }
  0x27   :  { %394 = vmatprep.subr.bf16.mxu1 %v1014_v13  ;;  %601 = vmatprep.subr.bf16.mxu0 %v1055_v40  ;;  %v1056_v42 = vld [vmem:[#allocation4 + $0x180] ss:$8 sps:$4 sm:$0xff]   ;;  %v1061_v43 = vld [vmem:[#allocation4 + $0x174] ss:$8 sps:$4 sm:$0xff]   ;;  %v1059_v44 = vld [vmem:[#allocation4 + $0x170] ss:$8 sps:$4 sm:$0xff]  }
  0x28   :  { %602 = vmatpush1.bf16.msra.mxu0 %v1053_v39  ;;  %v1064_v45 = vld [vmem:[#allocation4 + $0x164] ss:$8 sps:$4 sm:$0xff]   ;;  %v1062_v46 = vld [vmem:[#allocation4 + $0x160] ss:$8 sps:$4 sm:$0xff]   ;;  %v1067_v47 = vld [vmem:[#allocation4 + $0x154] ss:$8 sps:$4 sm:$0xff]  }
  0x29   :  { %603 = vmatprep.subr.bf16.mxu0 %v1058_v41  ;;  %v1065_v48 = vld [vmem:[#allocation4 + $0x150] ss:$8 sps:$4 sm:$0xff]   ;;  %v1070_v49 = vld [vmem:[#allocation4 + $0x144] ss:$8 sps:$4 sm:$0xff]   ;;  %v1068_v50 = vld [vmem:[#allocation4 + $0x140] ss:$8 sps:$4 sm:$0xff]  }
  0x2a   :  { %395 = vmatpush1.bf16.msra.mxu1 %v1016_v14  ;;  %v1073_v51 = vld [vmem:[#allocation4 + $0x134] ss:$8 sps:$4 sm:$0xff]   ;;  %v1071_v52 = vld [vmem:[#allocation4 + $0x130] ss:$8 sps:$4 sm:$0xff]   ;;  %v1076_v53 = vld [vmem:[#allocation4 + $0x124] ss:$8 sps:$4 sm:$0xff]  }
  0x2b   :  { %396 = vmatprep.subr.bf16.mxu1 %v1017_v15  ;;  %v1074_v54 = vld [vmem:[#allocation4 + $0x120] ss:$8 sps:$4 sm:$0xff]   ;;  %v1079_v55 = vld [vmem:[#allocation4 + $0x214] ss:$8 sps:$4 sm:$0xff]   ;;  %v1077_v56 = vld [vmem:[#allocation4 + $0x210] ss:$8 sps:$4 sm:$0xff]  }
  0x2c   :  { %604 = vmatpush1.bf16.msra.mxu0 %v1056_v42  ;;  %v1082_v57 = vld [vmem:[#allocation4 + $0x204] ss:$8 sps:$4 sm:$0xff]   ;;  %v1080_v58 = vld [vmem:[#allocation4 + $0x200] ss:$8 sps:$4 sm:$0xff]   ;;  %v1085_v59 = vld [vmem:[#allocation4 + $0x1f4] ss:$8 sps:$4 sm:$0xff]  }
  0x2d   :  { %605 = vmatprep.subr.bf16.mxu0 %v1061_v43  ;;  %v1083_v60 = vld [vmem:[#allocation4 + $0x1f0] ss:$8 sps:$4 sm:$0xff]   ;;  %v140_v63 = vld [vmem:[#allocation4 + $0x320] sm:$0x33]  ;;  %v145_v1 = vsub.s32 0, %v1239_v62 }
  0x2e   :  { %397 = vmatpush1.bf16.msra.mxu1 %v1019_v16  ;;  %v1241_v0 = vunpack.c.l.bf16 %v140_v63  ;;  %v1244_v2 = vunpack.c.h.bf16 %v140_v63  ;;  %v1088_v15 = vld [vmem:[#allocation4 + $0x1e4] ss:$8 sps:$4 sm:$0xff]   ;;  %v1086_v16 = vld [vmem:[#allocation4 + $0x1e0] ss:$8 sps:$4 sm:$0xff]   ;;  %v1127_v41 = vld [vmem:[#allocation4 + $0x314] ss:$8 sps:$4 sm:$0xff]  }
  0x2f   :  { %398 = vmatprep.subr.bf16.mxu1 %v1020_v17  ;;  %v1091_v17 = vld [vmem:[#allocation4 + $0x1d4] ss:$8 sps:$4 sm:$0xff]   ;;  %v1124_v39 = vld [vmem:[#allocation4 + $0x224] ss:$8 sps:$4 sm:$0xff]   ;;  %v1122_v40 = vld [vmem:[#allocation4 + $0x220] ss:$8 sps:$4 sm:$0xff]  }
  0x30   :  { %606 = vmatpush1.bf16.msra.mxu0 %v1059_v44  ;;  %v146_v3 = vrot.slane %v1241_v0, %v145_v1  ;;  %v150_v4 = vrot.slane %v1244_v2, %v145_v1  ;;  %v1125_v42 = vld [vmem:[#allocation4 + $0x310] ss:$8 sps:$4 sm:$0xff]   ;;  %v1130_v43 = vld [vmem:[#allocation4 + $0x304] ss:$8 sps:$4 sm:$0xff]   ;;  %v1128_v44 = vld [vmem:[#allocation4 + $0x300] ss:$8 sps:$4 sm:$0xff]  }
  0x31   :  { %607 = vmatprep.subr.bf16.mxu0 %v1064_v45  ;;  %v1133_v45 = vld [vmem:[#allocation4 + $0x2f4] ss:$8 sps:$4 sm:$0xff]   ;;  %v1134_v63 = vld [vmem:[#allocation4 + $0x2e0] ss:$8 sps:$4 sm:$0xff]  }
  0x32   :  { %399 = vmatpush1.bf16.msra.mxu1 %v1022_v18  ;;  %v1089_v18 = vld [vmem:[#allocation4 + $0x1d0] ss:$8 sps:$4 sm:$0xff]   ;;  %v1139_v1 = vld [vmem:[#allocation4 + $0x2d4] ss:$8 sps:$4 sm:$0xff]  }
  0x33   :  { %400 = vmatprep.subr.bf16.mxu1 %v1023_v19  ;;  %v1094_v19 = vld [vmem:[#allocation4 + $0x1c4] ss:$8 sps:$4 sm:$0xff]  }
  0x34   :  { %608 = vmatpush1.bf16.msra.mxu0 %v1062_v46  ;;  %v1131_v46 = vld [vmem:[#allocation4 + $0x2f0] ss:$8 sps:$4 sm:$0xff]  }
  0x35   :  { %609 = vmatprep.subr.bf16.mxu0 %v1067_v47  ;;  %v222_v47 = vsub.s32 1, %v1239_v62 }
  0x36   :  { %401 = vmatpush1.bf16.msra.mxu1 %v1025_v20  ;;  %v1092_v20 = vld [vmem:[#allocation4 + $0x1c0] ss:$8 sps:$4 sm:$0xff]  }
  0x37   :  { %402 = vmatprep.subr.bf16.mxu1 %v1026_v21  ;;  %v1097_v21 = vld [vmem:[#allocation4 + $0x1b4] ss:$8 sps:$4 sm:$0xff]  }
  0x38   :  { %610 = vmatpush1.bf16.msra.mxu0 %v1065_v48  ;;  %v223_v48 = vrot.slane %v1241_v0, %v222_v47 }
  0x39   :  { %611 = vmatprep.subr.bf16.mxu0 %v1070_v49  ;;  %v227_v49 = vrot.slane %v1244_v2, %v222_v47 }
  0x3a   :  { %403 = vmatpush1.bf16.msra.mxu1 %v1028_v22  ;;  %v1095_v22 = vld [vmem:[#allocation4 + $0x1b0] ss:$8 sps:$4 sm:$0xff]  }
  0x3b   :  { %404 = vmatprep.subr.bf16.mxu1 %v1029_v23  ;;  %v1100_v23 = vld [vmem:[#allocation4 + $0x1a4] ss:$8 sps:$4 sm:$0xff]  }
  0x3c   :  { %612 = vmatpush1.bf16.msra.mxu0 %v1068_v50 }
  0x3d   :  { %613 = vmatprep.subr.bf16.mxu0 %v1073_v51 }
  0x3e   :  { %405 = vmatpush2.bf16.msra.mxu1 %v1031_v24  ;;  %v1098_v24 = vld [vmem:[#allocation4 + $0x1a0] ss:$8 sps:$4 sm:$0xff]  }
  0x3f   :  { %406 = vmatprep.subr.bf16.mxu1 %v1032_v25  ;;  %v1101_v25 = vld [vmem:[#allocation4 + $0x290] ss:$8 sps:$4 sm:$0xff]  }
  0x40   :  { %614 = vmatpush1.bf16.msra.mxu0 %v1071_v52 }
  0x41   :  { %615 = vmatprep.subr.bf16.mxu0 %v1076_v53 }
  0x42   :  { %407 = vmatpush2.bf16.msra.mxu1 %v1034_v26  ;;  %v1103_v26 = vld [vmem:[#allocation4 + $0x294] ss:$8 sps:$4 sm:$0xff]  }
  0x43   :  { %408 = vmatprep.subr.bf16.mxu1 %v1035_v27  ;;  %v1106_v27 = vld [vmem:[#allocation4 + $0x284] ss:$8 sps:$4 sm:$0xff]  }
  0x44   :  { %616 = vmatpush1.bf16.msra.mxu0 %v1074_v54 }
  0x45   :  { %617 = vmatprep.subr.bf16.mxu0 %v1079_v55 }
  0x46   :  { %409 = vmatpush2.bf16.msra.mxu1 %v1037_v28  ;;  %v1104_v28 = vld [vmem:[#allocation4 + $0x280] ss:$8 sps:$4 sm:$0xff]  }
  0x47   :  { %410 = vmatprep.subr.bf16.mxu1 %v1038_v29  ;;  %v1109_v29 = vld [vmem:[#allocation4 + $0x274] ss:$8 sps:$4 sm:$0xff]  }
  0x48   :  { %618 = vmatpush2.bf16.msra.mxu0 %v1077_v56 }
  0x49   :  { %619 = vmatprep.subr.bf16.mxu0 %v1082_v57 }
  0x4a   :  { %411 = vmatpush2.bf16.msra.mxu1 %v1040_v30  ;;  %v1107_v30 = vld [vmem:[#allocation4 + $0x270] ss:$8 sps:$4 sm:$0xff]  }
  0x4b   :  { %412 = vmatprep.subr.bf16.mxu1 %v1041_v31  ;;  %v1112_v31 = vld [vmem:[#allocation4 + $0x264] ss:$8 sps:$4 sm:$0xff]  }
  0x4c   :  { %620 = vmatpush2.bf16.msra.mxu0 %v1080_v58 }
  0x4d   :  { %621 = vmatprep.subr.bf16.mxu0 %v1085_v59 }
  0x4e   :  { %413 = vmatpush2.bf16.msra.mxu1 %v1043_v32  ;;  %v1110_v32 = vld [vmem:[#allocation4 + $0x260] ss:$8 sps:$4 sm:$0xff]  }
  0x4f   :  { %414 = vmatprep.subr.bf16.mxu1 %v1044_v33  ;;  %v1115_v33 = vld [vmem:[#allocation4 + $0x254] ss:$8 sps:$4 sm:$0xff]  }
  0x50   :  { %622 = vmatpush2.bf16.msra.mxu0 %v1083_v60  ;;  %v1136_v60 = vld [vmem:[#allocation4 + $0x2e4] ss:$8 sps:$4 sm:$0xff]  }
  0x51   :  { %623 = vmatprep.subr.bf16.mxu0 %v1088_v15 }
  0x52   :  { %415 = vmatpush2.bf16.msra.mxu1 %v1046_v34  ;;  %v1113_v34 = vld [vmem:[#allocation4 + $0x250] ss:$8 sps:$4 sm:$0xff]  }
  0x53   :  { %416 = vmatprep.subr.bf16.mxu1 %v1047_v35  ;;  %v1118_v35 = vld [vmem:[#allocation4 + $0x244] ss:$8 sps:$4 sm:$0xff]  }
  0x54   :  { %624 = vmatpush2.bf16.msra.mxu0 %v1086_v16 }
  0x55   :  { %625 = vmatprep.subr.bf16.mxu0 %v1091_v17 }
  0x56   :  { %417 = vmatpush2.bf16.msra.mxu1 %v1049_v36  ;;  %v1116_v36 = vld [vmem:[#allocation4 + $0x240] ss:$8 sps:$4 sm:$0xff]  }
  0x57   :  { %418 = vmatprep.subr.bf16.mxu1 %v1050_v37  ;;  %v1121_v37 = vld [vmem:[#allocation4 + $0x234] ss:$8 sps:$4 sm:$0xff]  }
  0x58   :  { %626 = vmatpush2.bf16.msra.mxu0 %v1089_v18 }
  0x59   :  { %627 = vmatprep.subr.bf16.mxu0 %v1094_v19 }
  0x5a   :  { %419 = vmatpush2.bf16.msra.mxu1 %v1052_v38  ;;  %v1119_v38 = vld [vmem:[#allocation4 + $0x230] ss:$8 sps:$4 sm:$0xff]  }
  0x5b   :  { %810 = vmatprep.subr.bf16.mxu1 %v1103_v26 }
  0x5c   :  { %628 = vmatpush2.bf16.msra.mxu0 %v1092_v20 }
  0x5d   :  { %629 = vmatprep.subr.bf16.mxu0 %v1097_v21 }
  0x60   :  { %630 = vmatpush2.bf16.msra.mxu0 %v1095_v22 }
  0x61   :  { %631 = vmatprep.subr.bf16.mxu0 %v1100_v23  ;;  %v648_v23 = vsub.s32 3, %v1239_v62 }
  0x64   :  { %632 = vmatpush2.bf16.msra.mxu0 %v1098_v24  ;;  %v851_v24 = vand.u32 127, %v143_v61 }
  0x66   :  { %vm852_vm1 = vcmp.lt.s32.totalorder %v851_v24, 8  ;;  %vm875_vm2 = vcmp.eq.s32.totalorder %v851_v24, 8  ;;  %vm883_vm3 = vcmp.eq.s32.totalorder %v851_v24, 17 }
  0xe2   :  { %v209_v5 = vpop.f32.mrf.mxu0 }
  0xe3   :  { %v210_v6 = vadd.f32 %v209_v5, %v146_v3  ;;  %v1137_v3 = vld [vmem:[#allocation4 + $0x2d0] ss:$8 sps:$4 sm:$0xff]   ;;  %v1140_v5 = vld [vmem:[#allocation4 + $0x2c0] ss:$8 sps:$4 sm:$0xff]  }
  0xe4   :  { %v211_v7 = vpop.f32.mrf.mxu0 }
  0xe5   :  { %v212_v8 = vadd.f32 %v211_v7, %v150_v4  ;;  %1149 = vtanh.f32 %v210_v6  ;;  %v1142_v4 = vld [vmem:[#allocation4 + $0x2c4] ss:$8 sps:$4 sm:$0xff]   ;;  %v1145_v6 = vld [vmem:[#allocation4 + $0x2b4] ss:$8 sps:$4 sm:$0xff]   ;;  %v1143_v7 = vld [vmem:[#allocation4 + $0x2b0] ss:$8 sps:$4 sm:$0xff]  }
  0xe6   :  { %v213_v9 = vpop.f32.mrf.mxu0 }
  0xe7   :  { %1151 = vtanh.f32 %v212_v8  ;;  %v1148_v8 = vld [vmem:[#allocation4 + $0x2a4] ss:$8 sps:$4 sm:$0xff]   ;;  %v1146_v9 = vld [vmem:[#allocation4 + $0x2a0] ss:$8 sps:$4 sm:$0xff]  }
  0xe8   :  { %v214_v10 = vpop.f32.mrf.mxu0 }
  0xe9   :  { %v435_v10 = vsub.s32 2, %v1239_v62 }
  0xf2   :  { %v1150_v11 = vpop.eup %1149 }
  0xf3   :  { %v218_v14 = vpack.c.bf16 %v1150_v11, %v1150_v11  ;;  %v436_v11 = vrot.slane %v1241_v0, %v435_v10 }
  0xf4   :  { %v1152_v12 = vpop.eup %1151 }
  0xf5   :  { %v219_v13 = vpack.c.bf16 %v1152_v12, %v1152_v12  ;;  %v440_v12 = vrot.slane %v1244_v2, %v435_v10  ;;  %v649_v2 = vrot.slane %v1241_v0, %v648_v23 }
  0xf7   :  { %420 = vmatprep.mubr.bf16.mxu1 %v219_v13 }
  0xf8   :  { %421 = vmatmul.mubr.bf16.vlgmr.msra.gmra.mxu1 %v218_v14 }
  0xf9   :  { %811 = vmatpush1.bf16.msra.mxu1 %v1101_v25 }
  0xfa   :  { %812 = vmatprep.subr.bf16.mxu1 %v1106_v27 }
  0xfd   :  { %813 = vmatpush1.bf16.msra.mxu1 %v1104_v28 }
  0xfe   :  { %814 = vmatprep.subr.bf16.mxu1 %v1109_v29 }
 0x101   :  { %815 = vmatpush1.bf16.msra.mxu1 %v1107_v30 }
 0x102   :  { %816 = vmatprep.subr.bf16.mxu1 %v1112_v31 }
 0x105   :  { %817 = vmatpush1.bf16.msra.mxu1 %v1110_v32 }
 0x106   :  { %818 = vmatprep.subr.bf16.mxu1 %v1115_v33 }
 0x109   :  { %819 = vmatpush1.bf16.msra.mxu1 %v1113_v34 }
 0x10a   :  { %820 = vmatprep.subr.bf16.mxu1 %v1118_v35 }
 0x10d   :  { %821 = vmatpush1.bf16.msra.mxu1 %v1116_v36 }
 0x10e   :  { %822 = vmatprep.subr.bf16.mxu1 %v1121_v37 }
 0x111   :  { %823 = vmatpush1.bf16.msra.mxu1 %v1119_v38 }
 0x112   :  { %824 = vmatprep.subr.bf16.mxu1 %v1124_v39 }
 0x115   :  { %825 = vmatpush1.bf16.msra.mxu1 %v1122_v40 }
 0x116   :  { %826 = vmatprep.subr.bf16.mxu1 %v1127_v41 }
 0x119   :  { %827 = vmatpush2.bf16.msra.mxu1 %v1125_v42 }
 0x11a   :  { %828 = vmatprep.subr.bf16.mxu1 %v1130_v43 }
 0x11d   :  { %829 = vmatpush2.bf16.msra.mxu1 %v1128_v44 }
 0x11e   :  { %830 = vmatprep.subr.bf16.mxu1 %v1133_v45 }
 0x121   :  { %831 = vmatpush2.bf16.msra.mxu1 %v1131_v46 }
 0x122   :  { %832 = vmatprep.subr.bf16.mxu1 %v1136_v60 }
 0x125   :  { %833 = vmatpush2.bf16.msra.mxu1 %v1134_v63 }
 0x126   :  { %834 = vmatprep.subr.bf16.mxu1 %v1139_v1 }
 0x129   :  { %835 = vmatpush2.bf16.msra.mxu1 %v1137_v3 }
 0x12a   :  { %836 = vmatprep.subr.bf16.mxu1 %v1142_v4 }
 0x12d   :  { %837 = vmatpush2.bf16.msra.mxu1 %v1140_v5 }
 0x12e   :  { %838 = vmatprep.subr.bf16.mxu1 %v1145_v6 }
 0x131   :  { %839 = vmatpush2.bf16.msra.mxu1 %v1143_v7 }
 0x132   :  { %840 = vmatprep.subr.bf16.mxu1 %v1148_v8 }
 0x135   :  { %841 = vmatpush2.bf16.msra.mxu1 %v1146_v9 }
 0x1b8   :  { %v422_v50 = vpop.f32.mrf.mxu1 }
 0x1b9   :  { %v423_v51 = vadd.f32 %v422_v50, %v223_v48 }
 0x1ba   :  { %v424_v52 = vpop.f32.mrf.mxu1 }
 0x1bb   :  { %v425_v53 = vadd.f32 %v424_v52, %v227_v49  ;;  %1153 = vtanh.f32 %v423_v51 }
 0x1bc   :  { %v426_v54 = vpop.f32.mrf.mxu1 }
 0x1bd   :  { %1155 = vtanh.f32 %v425_v53 }
 0x1be   :  { %v427_v55 = vpop.f32.mrf.mxu1 }
 0x1c8   :  { %v1154_v56 = vpop.eup %1153 }
 0x1c9   :  { %v431_v59 = vpack.c.bf16 %v1154_v56, %v1154_v56 }
 0x1ca   :  { %v1156_v57 = vpop.eup %1155 }
 0x1cb   :  { %v432_v58 = vpack.c.bf16 %v1156_v57, %v1156_v57 }
 0x1cd   :  { %633 = vmatprep.mubr.bf16.mxu0 %v432_v58 }
 0x1ce   :  { %634 = vmatmul.mubr.bf16.vlgmr.msra.gmra.mxu0 %v431_v59 }
 0x28e   :  { %v635_v13 = vpop.f32.mrf.mxu0 }
 0x28f   :  { %v636_v14 = vadd.f32 %v635_v13, %v436_v11 }
 0x290   :  { %v637_v15 = vpop.f32.mrf.mxu0 }
 0x291   :  { %v638_v16 = vadd.f32 %v637_v15, %v440_v12  ;;  %1157 = vtanh.f32 %v636_v14 }
 0x292   :  { %v639_v17 = vpop.f32.mrf.mxu0 }
 0x293   :  { %1159 = vtanh.f32 %v638_v16 }
 0x294   :  { %v640_v18 = vpop.f32.mrf.mxu0 }
 0x29e   :  { %v1158_v19 = vpop.eup %1157 }
 0x29f   :  { %v644_v22 = vpack.c.bf16 %v1158_v19, %v1158_v19 }
 0x2a0   :  { %v1160_v20 = vpop.eup %1159 }
 0x2a1   :  { %v645_v21 = vpack.c.bf16 %v1160_v20, %v1160_v20 }
 0x2a3   :  { %842 = vmatprep.mubr.bf16.mxu1 %v645_v21 }
 0x2a4   :  { %843 = vmatmul.mubr.bf16.vlgmr.msra.gmra.mxu1 %v644_v22 }
 0x364   :  { %v844_v25 = vpop.f32.mrf.mxu1 }
 0x365   :  { %v845_v26 = vadd.f32 %v844_v25, %v649_v2 }
 0x366   :  { %v846_v27 = vpop.f32.mrf.mxu1 }
 0x367   :  { %v853_v28 = vsel %vm852_vm1, %v845_v26, -1e+30  ;;  %v876_v61 = vsel %vm875_vm2, %v845_v26, 0.0 }
 0x368   :  { %v847_v29 = vpop.f32.mrf.mxu1  ;;  %854 = vmax.xlane.f32.xlu0 %v853_v28 }
 0x36a   :  { %v848_v30 = vpop.f32.mrf.mxu1 }
 0x3f1   :  { %v855_v31 = vpop.xlane.xlu0 %854 }
 0x3f2   :  { %v856_v32 = vsub.f32 %v845_v26, %v855_v31 }
 0x3f4   :  { %v857_v33 = vmul.f32 1.442695, %v856_v32 }
 0x3f6   :  { %1161 = vpow2.f32 %v857_v33 }
 0x403   :  { %v1162_v34 = vpop.eup %1161 }
 0x404   :  { %v859_v62 = vsel %vm852_vm1, %v1162_v34, 0.0 }
 0x405   :  { %860 = vadd.xlane.f32.xlu0 %v859_v62 }
 0x41b   :  { %880 = vrot.lane.b32.xlu0 %v876_v61, %s1214_s18 }
 0x48e   :  { %v861_v0 = vpop.xlane.xlu0 %860 }
 0x48f   :  { %1163 = vrcp.f32 %v861_v0 }
 0x490   :  { %1165 = vlog2.f32 %v861_v0 }
 0x492   :  { %v881_v49 = vpop.permute.xlu0 %880 }
 0x49c   :  { %v1164_v35 = vpop.eup %1163 }
 0x49d   :  { %v1166_v36 = vpop.eup %1165  ;;  %v863_v37 = vmul.f32 %v1164_v35, %v861_v0 }
 0x49e   :  { %v868_v38 = vmul.f32 0.6931472, %v1166_v36 }
 0x49f   :  { %v864_v39 = vsub.f32 2.0, %v863_v37 }
 0x4a0   :  { %v869_v40 = vsub.f32 %v856_v32, %v868_v38 }
 0x4a1   :  { %v865_v41 = vmul.f32 %v1164_v35, %v864_v39 }
 0x4a2   :  { %v870_v43 = vsel %vm852_vm1, %v869_v40, 0.0 }
 0x4a3   :  { %v866_v42 = vmul.f32 %v865_v41, %v859_v62 }
 0x4a5   :  { %v871_v44 = vmul.f32 %v870_v43, %v866_v42 }
 0x4a7   :  { %872 = vadd.xlane.f32.xlu1 %v871_v44 }
 0x4b8   :  { %877 = vrot.lane.b32.xlu1 %v870_v43, %s1214_s18 }
 0x530   :  { %v873_v45 = vpop.xlane.xlu1 %872 }
 0x531   :  { %v874_v46 = vsub.f32 0.0, %v873_v45 }
 0x533   :  { %v884_v51 = vsel %vm883_vm3, %v874_v46, 0.0 }
 0x534   :  { %v878_v47 = vpop.permute.xlu1 %877 }
 0x535   :  { %v879_v48 = vadd.f32 %v878_v47, %v866_v42 }
 0x537   :  { %v882_v50 = vadd.f32 %v881_v49, %v879_v48 }
 0x539   :  { %v885_v52 = vadd.f32 %v884_v51, %v882_v50 }
 0x53b   :  { %886 = vst [vmem:[%s1267_s2] sm:$0xff] %v885_v52 }
 0x53c   :  { %891 = vsyncpa [#allocation3], 1 }
 0x53d   :  { %892 = vsyncpa [#allocation5], 1 }

</bundles_post_ra>
